<compile_context>
chip_gen: v5e
topology: v5e:2x2
jax: 0.10.0
libtpu: 0.0.40
codegen_flags: <defaults>
</compile_context>

<pallas_src>
import functools

import jax
import jax.numpy as jnp
from jax.experimental import pallas as pl
from jax.experimental.pallas import tpu as pltpu


def _round_up(v, m):
    return ((v + m - 1) // m) * m


def _ln_relu(v, gamma, beta, true_hid, eps=1e-5):
    """ReLU(LayerNorm(v)) with the reduction masked to the true hidden width.

    Padded lanes (index >= true_hid) carry zeros in v / gamma / beta and stay
    zero in the output, so downstream matmuls against zero-padded weights are
    exact.
    """
    hid_p = v.shape[-1]
    if hid_p != true_hid:
        mask = jax.lax.broadcasted_iota(jnp.int32, (1, hid_p), 1) < true_hid
        v = jnp.where(mask, v, 0.0)
        mu = jnp.sum(v, axis=-1, keepdims=True) * (1.0 / true_hid)
        d = jnp.where(mask, v - mu, 0.0)
        var = jnp.sum(d * d, axis=-1, keepdims=True) * (1.0 / true_hid)
    else:
        mu = jnp.mean(v, axis=-1, keepdims=True)
        d = v - mu
        var = jnp.mean(d * d, axis=-1, keepdims=True)
    y = d * jax.lax.rsqrt(var + eps) * gamma + beta
    return jnp.maximum(y, 0.0)


def mlp_kernel(x_ref, w_enc_ref, b_enc_ref, w_c0_ref, b_c0_ref,
               gamma_ref, beta_ref, w_out_ref, b_out_ref, o_ref, *, true_hid):
    # The chain keeps at most ~2-3 (tile, hid) f32 temporaries live at once
    # (x0 dies into x1, h dies into x2, ...), limiting vreg/VMEM pressure.
    x = x_ref[...].astype(jnp.bfloat16)     # [tile, in_p] (usually already bf16)
    gamma = gamma_ref[...]                  # f32 [1, hid_p]
    beta = beta_ref[...]                    # f32 [1, hid_p]
    w_c0 = w_c0_ref[...]                    # bf16 [hid_p, hid_p]
    b_c0 = b_c0_ref[...]                    # f32 [1, hid_p]

    # node_encoder
    x0 = jnp.dot(x, w_enc_ref[...],
                 preferred_element_type=jnp.float32) + b_enc_ref[...]
    # layers[0].conv applied explicitly before the layer loop
    x1 = jnp.dot(x0.astype(jnp.bfloat16), w_c0,
                 preferred_element_type=jnp.float32) + b_c0

    # layers[0] (unfixed): norm -> relu -> dropout(identity) -> conv -> + residual
    h = _ln_relu(x1, gamma, beta, true_hid)
    h = jnp.dot(h.astype(jnp.bfloat16), w_c0,
                preferred_element_type=jnp.float32) + b_c0
    x2 = h + x1
    # layers[1:] are fixed -> identity

    # final norm / relu (reusing layers[0] params); dropout(p=0.1) is identity.
    x3 = _ln_relu(x2, gamma, beta, true_hid)

    out = jnp.dot(x3.astype(jnp.bfloat16), w_out_ref[...],
                  preferred_element_type=jnp.float32) + b_out_ref[...]
    o_ref[...] = out.astype(o_ref.dtype)


def _vmem_capacity_bytes():
    try:
        cap = getattr(pltpu.get_tpu_info(), "vmem_capacity_bytes", None)
        if cap:
            return int(cap)
    except Exception:
        pass
    return 64 * 1024 * 1024    # conservative default: v7x per-TensorCore VMEM


def _pad2(a, rows, cols, dtype):
    a = a.astype(dtype)
    if a.shape == (rows, cols):
        return a
    return jnp.zeros((rows, cols), dtype).at[:a.shape[0], :a.shape[1]].set(a)


@functools.partial(
    jax.jit, static_argnames=("tile_n", "out_dtype", "single_buffer_consts"))
def mlp_forward(x, edge_index, params, *, tile_n=None, out_dtype=jnp.float32,
                single_buffer_consts=True):
    # edge_index is accepted for API parity but unused (lin=True Linear "conv").
    del edge_index
    (w_enc, b_enc, w_c0, b_c0, gamma, beta, w_out, b_out) = params

    n, in_c = x.shape
    hid = w_enc.shape[1]
    out_c = w_out.shape[1]

    # --- lane padding: MXU/vreg-dense feature dims (multiples of 128) --------
    in_p = max(128, _round_up(in_c, 128))
    hid_p = max(128, _round_up(hid, 128))
    out_p = max(128, _round_up(out_c, 128))

    # NOTE: in production the padded/bf16 weights would be prepared once at
    # load time; kept inline here so the script is self-contained.
    w_enc_p = _pad2(w_enc, in_p, hid_p, jnp.bfloat16)
    w_c0_p = _pad2(w_c0, hid_p, hid_p, jnp.bfloat16)
    w_out_p = _pad2(w_out, hid_p, out_p, jnp.bfloat16)
    b_enc_p = _pad2(b_enc, 1, hid_p, jnp.float32)
    b_c0_p = _pad2(b_c0, 1, hid_p, jnp.float32)
    gamma_p = _pad2(gamma, 1, hid_p, jnp.float32)
    beta_p = _pad2(beta, 1, hid_p, jnp.float32)
    b_out_p = _pad2(b_out, 1, out_p, jnp.float32)

    # --- footprint-derived row tile and VMEM budget ---------------------------
    vmem_cap = _vmem_capacity_bytes()
    budget = int(0.75 * vmem_cap)          # <=~48 MiB on v7x, <=~96 MiB on v5e/v6e
    const_bufs = 1 if single_buffer_consts else 2
    const_bytes = const_bufs * (
        2 * (in_p * hid_p + hid_p * hid_p + hid_p * out_p)     # bf16 weights
        + 4 * (5 * hid_p + out_p))                             # f32 biases / LN
    x_item = 2 if (in_p != in_c) else x.dtype.itemsize
    out_item = jnp.dtype(out_dtype).itemsize
    # per-row bytes: double-buffered x/out tiles + ~4 live (tile,hid_p) f32
    # temporaries + one (tile,out_p) f32 accumulator.
    per_row = 2 * in_p * x_item + 2 * out_p * out_item + 4 * 4 * hid_p + 4 * out_p
    fit_cap = max(8, ((budget - const_bytes) // per_row) // 8 * 8)

    default_cap = 2048 if vmem_cap >= 100 * 1024 * 1024 else 1024
    user_cap = default_cap if tile_n is None else _round_up(max(int(tile_n), 8), 8)
    # keep >=4 grid steps for megacore sharding once there is enough work, but
    # never shrink the tile below 256 rows just for step count.
    par_cap = max(256, _round_up(-(-n // 4), 8))
    tile = max(8, min(user_cap, fit_cap, par_cap, _round_up(max(n, 1), 8)))

    n_pad = _round_up(max(n, 1), tile)
    if n_pad != n or in_p != in_c:
        # pad + cast in the same XLA pass: bf16 halves streamed input bytes.
        x_p = jnp.zeros((n_pad, in_p), jnp.bfloat16).at[:n, :in_c].set(
            x.astype(jnp.bfloat16))
    else:
        x_p = x    # already lane-dense / tile-aligned: avoid a standalone pass
    grid = (n_pad // tile,)

    def const_spec(shape):
        idx = lambda i: (0, 0)
        if single_buffer_consts:
            # grid-invariant operand: a single VMEM buffer is enough.
            return pl.BlockSpec(shape, idx, pipeline_mode=pl.Buffered(1))
        return pl.BlockSpec(shape, idx)

    in_specs = [
        pl.BlockSpec((tile, in_p), lambda i: (i, 0)),      # x (row-tiled, bf16)
        const_spec((in_p, hid_p)),                         # w_enc
        const_spec((1, hid_p)),                            # b_enc
        const_spec((hid_p, hid_p)),                        # w_c0
        const_spec((1, hid_p)),                            # b_c0
        const_spec((1, hid_p)),                            # gamma
        const_spec((1, hid_p)),                            # beta
        const_spec((hid_p, out_p)),                        # w_out
        const_spec((1, out_p)),                            # b_out
    ]
    out_specs = pl.BlockSpec((tile, out_p), lambda i: (i, 0))

    flops = 2 * n_pad * (in_p * hid_p + 2 * hid_p * hid_p + hid_p * out_p)
    bytes_accessed = (x_item * n_pad * in_p + out_item * n_pad * out_p
                      + const_bytes // const_bufs)
    cost = pl.CostEstimate(flops=flops, transcendentals=2 * n_pad,
                           bytes_accessed=bytes_accessed)

    out_padded = pl.pallas_call(
        functools.partial(mlp_kernel, true_hid=hid),
        out_shape=jax.ShapeDtypeStruct((n_pad, out_p), out_dtype),
        grid=grid,
        in_specs=in_specs,
        out_specs=out_specs,
        compiler_params=pltpu.CompilerParams(
            dimension_semantics=("parallel",),
            vmem_limit_bytes=budget,
        ),
        cost_estimate=cost,
    )(x_p, w_enc_p, b_enc_p, w_c0_p, b_c0_p, gamma_p, beta_p, w_out_p, b_out_p)

    return out_padded[:n, :out_c]


def init_params(key, in_channels, hidden_channels, out_channels):
    """Deterministic init mimicking torch.nn.Linear defaults
    (uniform +-1/sqrt(fan_in)); LayerNorm affine: gamma=1, beta=0."""
    ks = jax.random.split(key, 6)

    def linear(kw, kb, fan_in, fan_out):
        bound = 1.0 / jnp.sqrt(fan_in)
        # stored transposed: [fan_in, fan_out] so the kernel computes x @ W
        w = jax.random.uniform(kw, (fan_in, fan_out), jnp.float32, -bound, bound)
        b = jax.random.uniform(kb, (1, fan_out), jnp.float32, -bound, bound)
        return w, b

    w_enc, b_enc = linear(ks[0], ks[1], in_channels, hidden_channels)
    w_c0, b_c0 = linear(ks[2], ks[3], hidden_channels, hidden_channels)
    w_out, b_out = linear(ks[4], ks[5], hidden_channels, out_channels)
    gamma = jnp.ones((1, hidden_channels), jnp.float32)
    beta = jnp.zeros((1, hidden_channels), jnp.float32)
    return (w_enc, b_enc, w_c0, b_c0, gamma, beta, w_out, b_out)


def reference_forward(x, params):
    (w_enc, b_enc, w_c0, b_c0, gamma, beta, w_out, b_out) = params

    def ln(v):
        mu = jnp.mean(v, axis=-1, keepdims=True)
        var = jnp.mean((v - mu) ** 2, axis=-1, keepdims=True)
        return (v - mu) * jax.lax.rsqrt(var + 1e-5) * gamma + beta

    x0 = x @ w_enc + b_enc
    x1 = x0 @ w_c0 + b_c0
    h = jnp.maximum(ln(x1), 0.0)
    h = h @ w_c0 + b_c0
    x2 = h + x1
    x3 = jnp.maximum(ln(x2), 0.0)
    return x3 @ w_out + b_out


if __name__ == "__main__":
    key = jax.random.PRNGKey(0)
    k_x, k_e, k_p, k_x2 = jax.random.split(key, 4)

    # Small graph-like input: N=8 nodes, in=16, hidden=32, out=8, num_layers=3.
    N, IN_C, HID_C, OUT_C = 8, 16, 32, 8
    x = jax.random.normal(k_x, (N, IN_C), dtype=jnp.float32)
    edge_index = jax.random.randint(k_e, (2, 20), 0, N, dtype=jnp.int32)  # unused
    params = init_params(k_p, IN_C, HID_C, OUT_C)

    # Prefer single-buffered grid-invariant operands (pl.Buffered(1)); fall back
    # to default buffering if this JAX/Mosaic build rejects the request.
    single_buf = True
    try:
        out = jax.block_until_ready(
            mlp_forward(x, edge_index, params, single_buffer_consts=True))
    except Exception:
        single_buf = False
        out = jax.block_until_ready(
            mlp_forward(x, edge_index, params, single_buffer_consts=False))

    ref = reference_forward(x, params)
    assert out.shape == (N, OUT_C)
    # bf16 MXU inputs with f32 accumulation -> modest tolerance vs f32 reference.
    assert jnp.allclose(out, ref, atol=5e-2, rtol=5e-2), "mismatch vs reference"

    # Exercise the multi-tile grid plus row/lane padding path (N not tile-aligned).
    N2 = 1000
    x2 = jax.random.normal(k_x2, (N2, IN_C), dtype=jnp.float32)
    out2 = jax.block_until_ready(
        mlp_forward(x2, edge_index, params, tile_n=256,
                    single_buffer_consts=single_buf))
    ref2 = reference_forward(x2, params)
    assert out2.shape == (N2, OUT_C)
    assert jnp.allclose(out2, ref2, atol=5e-2, rtol=5e-2), "mismatch (tiled)"

    print("KERNEL_OK")
</pallas_src>

<mosaic_0001>
module attributes {stable_mosaic.version = 11 : i64} {
  func.func @mlp_kernel(%arg0: i32, %arg1: memref<8x128xbf16, #tpu.memory_space<vmem>>, %arg2: memref<128x128xbf16, #tpu.memory_space<vmem>>, %arg3: memref<1x128xf32, #tpu.memory_space<vmem>>, %arg4: memref<128x128xbf16, #tpu.memory_space<vmem>>, %arg5: memref<1x128xf32, #tpu.memory_space<vmem>>, %arg6: memref<1x128xf32, #tpu.memory_space<vmem>>, %arg7: memref<1x128xf32, #tpu.memory_space<vmem>>, %arg8: memref<128x128xbf16, #tpu.memory_space<vmem>>, %arg9: memref<1x128xf32, #tpu.memory_space<vmem>>, %arg10: memref<8x128xf32, #tpu.memory_space<vmem>>) attributes {dimension_semantics = [#tpu.dimension_semantics<parallel>], iteration_bounds = array<i64: 1>, scalar_prefetch = 0 : i64, scratch_operands = 0 : i64, tpu.core_type = #tpu.core_type<tc>, window_params = [{transform_indices = @transform_0, window_bounds = array<i64: 8, 128>}, {pipeline_mode = #tpu.pipeline_mode<synchronous>, transform_indices = @transform_1, window_bounds = array<i64: 128, 128>}, {pipeline_mode = #tpu.pipeline_mode<synchronous>, transform_indices = @transform_2, window_bounds = array<i64: 1, 128>}, {pipeline_mode = #tpu.pipeline_mode<synchronous>, transform_indices = @transform_3, window_bounds = array<i64: 128, 128>}, {pipeline_mode = #tpu.pipeline_mode<synchronous>, transform_indices = @transform_4, window_bounds = array<i64: 1, 128>}, {pipeline_mode = #tpu.pipeline_mode<synchronous>, transform_indices = @transform_5, window_bounds = array<i64: 1, 128>}, {pipeline_mode = #tpu.pipeline_mode<synchronous>, transform_indices = @transform_6, window_bounds = array<i64: 1, 128>}, {pipeline_mode = #tpu.pipeline_mode<synchronous>, transform_indices = @transform_7, window_bounds = array<i64: 128, 128>}, {pipeline_mode = #tpu.pipeline_mode<synchronous>, transform_indices = @transform_8, window_bounds = array<i64: 1, 128>}, {transform_indices = @transform_9, window_bounds = array<i64: 8, 128>}]} {
    %c0 = arith.constant 0 : index
    %c0_0 = arith.constant 0 : index
    %0 = vector.load %arg1[%c0, %c0_0] : memref<8x128xbf16, #tpu.memory_space<vmem>>, vector<8x128xbf16>
    %c0_1 = arith.constant 0 : index
    %c0_2 = arith.constant 0 : index
    %1 = vector.load %arg6[%c0_1, %c0_2] : memref<1x128xf32, #tpu.memory_space<vmem>>, vector<1x128xf32>
    %c0_3 = arith.constant 0 : index
    %c0_4 = arith.constant 0 : index
    %2 = vector.load %arg7[%c0_3, %c0_4] : memref<1x128xf32, #tpu.memory_space<vmem>>, vector<1x128xf32>
    %c0_5 = arith.constant 0 : index
    %c0_6 = arith.constant 0 : index
    %3 = vector.load %arg4[%c0_5, %c0_6] : memref<128x128xbf16, #tpu.memory_space<vmem>>, vector<128x128xbf16>
    %c0_7 = arith.constant 0 : index
    %c0_8 = arith.constant 0 : index
    %4 = vector.load %arg5[%c0_7, %c0_8] : memref<1x128xf32, #tpu.memory_space<vmem>>, vector<1x128xf32>
    %c0_9 = arith.constant 0 : index
    %c0_10 = arith.constant 0 : index
    %5 = vector.load %arg2[%c0_9, %c0_10] : memref<128x128xbf16, #tpu.memory_space<vmem>>, vector<128x128xbf16>
    %cst = arith.constant dense<0.000000e+00> : vector<8x128xf32>
    %6 = tpu.matmul %0, %5, %cst {dimension_numbers = #tpu.dot_dimension_numbers<[1], [0], [0], [1], [0, 0, 1, 1], [], []>} : vector<8x128xbf16>, vector<128x128xbf16>, vector<8x128xf32> -> vector<8x128xf32>
    %c0_11 = arith.constant 0 : index
    %c0_12 = arith.constant 0 : index
    %7 = vector.load %arg3[%c0_11, %c0_12] : memref<1x128xf32, #tpu.memory_space<vmem>>, vector<1x128xf32>
    %8 = vector.broadcast %7 : vector<1x128xf32> to vector<8x128xf32>
    %9 = arith.addf %6, %8 : vector<8x128xf32>
    %10 = arith.truncf %9 : vector<8x128xf32> to vector<8x128xbf16>
    %cst_13 = arith.constant dense<0.000000e+00> : vector<8x128xf32>
    %11 = tpu.matmul %10, %3, %cst_13 {dimension_numbers = #tpu.dot_dimension_numbers<[1], [0], [0], [1], [0, 0, 1, 1], [], []>} : vector<8x128xbf16>, vector<128x128xbf16>, vector<8x128xf32> -> vector<8x128xf32>
    %12 = vector.broadcast %4 : vector<1x128xf32> to vector<8x128xf32>
    %13 = arith.addf %11, %12 : vector<8x128xf32>
    %14 = tpu.iota {dimensions = array<i32: 1>} : vector<1x128xi32>
    %c32_i32 = arith.constant 32 : i32
    %15 = vector.broadcast %c32_i32 : i32 to vector<1x128xi32>
    %16 = arith.cmpi slt, %14, %15 : vector<1x128xi32>
    %cst_14 = arith.constant 0.000000e+00 : f32
    %17 = vector.shape_cast %16 : vector<1x128xi1> to vector<1x128xi1>
    %18 = vector.broadcast %17 : vector<1x128xi1> to vector<8x128xi1>
    %19 = vector.broadcast %cst_14 : f32 to vector<8x128xf32>
    %20 = arith.select %18, %13, %19 : vector<8x128xi1>, vector<8x128xf32>
    %cst_15 = arith.constant dense<0.000000e+00> : vector<8xf32>
    %21 = vector.multi_reduction <add>, %20, %cst_15 [1] : vector<8x128xf32> to vector<8xf32>
    %22 = vector.shape_cast %21 : vector<8xf32> to vector<8x1xf32>
    %cst_16 = arith.constant 3.125000e-02 : f32
    %23 = vector.broadcast %cst_16 : f32 to vector<8x1xf32>
    %24 = arith.mulf %22, %23 : vector<8x1xf32>
    %25 = vector.broadcast %24 : vector<8x1xf32> to vector<8x128xf32>
    %26 = arith.subf %20, %25 : vector<8x128xf32>
    %cst_17 = arith.constant 0.000000e+00 : f32
    %27 = vector.shape_cast %16 : vector<1x128xi1> to vector<1x128xi1>
    %28 = vector.broadcast %27 : vector<1x128xi1> to vector<8x128xi1>
    %29 = vector.broadcast %cst_17 : f32 to vector<8x128xf32>
    %30 = arith.select %28, %26, %29 : vector<8x128xi1>, vector<8x128xf32>
    %31 = arith.mulf %30, %30 : vector<8x128xf32>
    %cst_18 = arith.constant dense<0.000000e+00> : vector<8xf32>
    %32 = vector.multi_reduction <add>, %31, %cst_18 [1] : vector<8x128xf32> to vector<8xf32>
    %33 = vector.shape_cast %32 : vector<8xf32> to vector<8x1xf32>
    %cst_19 = arith.constant 3.125000e-02 : f32
    %34 = vector.broadcast %cst_19 : f32 to vector<8x1xf32>
    %35 = arith.mulf %33, %34 : vector<8x1xf32>
    %cst_20 = arith.constant 9.99999974E-6 : f32
    %36 = vector.broadcast %cst_20 : f32 to vector<8x1xf32>
    %37 = arith.addf %35, %36 : vector<8x1xf32>
    %38 = math.rsqrt %37 : vector<8x1xf32>
    %39 = vector.broadcast %38 : vector<8x1xf32> to vector<8x128xf32>
    %40 = arith.mulf %30, %39 : vector<8x128xf32>
    %41 = vector.broadcast %1 : vector<1x128xf32> to vector<8x128xf32>
    %42 = arith.mulf %40, %41 : vector<8x128xf32>
    %43 = vector.broadcast %2 : vector<1x128xf32> to vector<8x128xf32>
    %44 = arith.addf %42, %43 : vector<8x128xf32>
    %cst_21 = arith.constant 0.000000e+00 : f32
    %45 = vector.broadcast %cst_21 : f32 to vector<8x128xf32>
    %46 = arith.maximumf %44, %45 : vector<8x128xf32>
    %47 = arith.truncf %46 : vector<8x128xf32> to vector<8x128xbf16>
    %cst_22 = arith.constant dense<0.000000e+00> : vector<8x128xf32>
    %48 = tpu.matmul %47, %3, %cst_22 {dimension_numbers = #tpu.dot_dimension_numbers<[1], [0], [0], [1], [0, 0, 1, 1], [], []>} : vector<8x128xbf16>, vector<128x128xbf16>, vector<8x128xf32> -> vector<8x128xf32>
    %49 = vector.broadcast %4 : vector<1x128xf32> to vector<8x128xf32>
    %50 = arith.addf %48, %49 : vector<8x128xf32>
    %51 = arith.addf %50, %13 : vector<8x128xf32>
    %52 = tpu.iota {dimensions = array<i32: 1>} : vector<1x128xi32>
    %c32_i32_23 = arith.constant 32 : i32
    %53 = vector.broadcast %c32_i32_23 : i32 to vector<1x128xi32>
    %54 = arith.cmpi slt, %52, %53 : vector<1x128xi32>
    %cst_24 = arith.constant 0.000000e+00 : f32
    %55 = vector.shape_cast %54 : vector<1x128xi1> to vector<1x128xi1>
    %56 = vector.broadcast %55 : vector<1x128xi1> to vector<8x128xi1>
    %57 = vector.broadcast %cst_24 : f32 to vector<8x128xf32>
    %58 = arith.select %56, %51, %57 : vector<8x128xi1>, vector<8x128xf32>
    %cst_25 = arith.constant dense<0.000000e+00> : vector<8xf32>
    %59 = vector.multi_reduction <add>, %58, %cst_25 [1] : vector<8x128xf32> to vector<8xf32>
    %60 = vector.shape_cast %59 : vector<8xf32> to vector<8x1xf32>
    %cst_26 = arith.constant 3.125000e-02 : f32
    %61 = vector.broadcast %cst_26 : f32 to vector<8x1xf32>
    %62 = arith.mulf %60, %61 : vector<8x1xf32>
    %63 = vector.broadcast %62 : vector<8x1xf32> to vector<8x128xf32>
    %64 = arith.subf %58, %63 : vector<8x128xf32>
    %cst_27 = arith.constant 0.000000e+00 : f32
    %65 = vector.shape_cast %54 : vector<1x128xi1> to vector<1x128xi1>
    %66 = vector.broadcast %65 : vector<1x128xi1> to vector<8x128xi1>
    %67 = vector.broadcast %cst_27 : f32 to vector<8x128xf32>
    %68 = arith.select %66, %64, %67 : vector<8x128xi1>, vector<8x128xf32>
    %69 = arith.mulf %68, %68 : vector<8x128xf32>
    %cst_28 = arith.constant dense<0.000000e+00> : vector<8xf32>
    %70 = vector.multi_reduction <add>, %69, %cst_28 [1] : vector<8x128xf32> to vector<8xf32>
    %71 = vector.shape_cast %70 : vector<8xf32> to vector<8x1xf32>
    %cst_29 = arith.constant 3.125000e-02 : f32
    %72 = vector.broadcast %cst_29 : f32 to vector<8x1xf32>
    %73 = arith.mulf %71, %72 : vector<8x1xf32>
    %cst_30 = arith.constant 9.99999974E-6 : f32
    %74 = vector.broadcast %cst_30 : f32 to vector<8x1xf32>
    %75 = arith.addf %73, %74 : vector<8x1xf32>
    %76 = math.rsqrt %75 : vector<8x1xf32>
    %77 = vector.broadcast %76 : vector<8x1xf32> to vector<8x128xf32>
    %78 = arith.mulf %68, %77 : vector<8x128xf32>
    %79 = vector.broadcast %1 : vector<1x128xf32> to vector<8x128xf32>
    %80 = arith.mulf %78, %79 : vector<8x128xf32>
    %81 = vector.broadcast %2 : vector<1x128xf32> to vector<8x128xf32>
    %82 = arith.addf %80, %81 : vector<8x128xf32>
    %cst_31 = arith.constant 0.000000e+00 : f32
    %83 = vector.broadcast %cst_31 : f32 to vector<8x128xf32>
    %84 = arith.maximumf %82, %83 : vector<8x128xf32>
    %85 = arith.truncf %84 : vector<8x128xf32> to vector<8x128xbf16>
    %c0_32 = arith.constant 0 : index
    %c0_33 = arith.constant 0 : index
    %86 = vector.load %arg8[%c0_32, %c0_33] : memref<128x128xbf16, #tpu.memory_space<vmem>>, vector<128x128xbf16>
    %cst_34 = arith.constant dense<0.000000e+00> : vector<8x128xf32>
    %87 = tpu.matmul %85, %86, %cst_34 {dimension_numbers = #tpu.dot_dimension_numbers<[1], [0], [0], [1], [0, 0, 1, 1], [], []>} : vector<8x128xbf16>, vector<128x128xbf16>, vector<8x128xf32> -> vector<8x128xf32>
    %c0_35 = arith.constant 0 : index
    %c0_36 = arith.constant 0 : index
    %88 = vector.load %arg9[%c0_35, %c0_36] : memref<1x128xf32, #tpu.memory_space<vmem>>, vector<1x128xf32>
    %89 = vector.broadcast %88 : vector<1x128xf32> to vector<8x128xf32>
    %90 = arith.addf %87, %89 : vector<8x128xf32>
    %c0_37 = arith.constant 0 : index
    %c0_38 = arith.constant 0 : index
    %91 = vector.load %arg10[%c0_37, %c0_38] : memref<8x128xf32, #tpu.memory_space<vmem>>, vector<8x128xf32>
    tpu.vector_store %arg10[%c0_37, %c0_38], %90 {strides = array<i32>} : memref<8x128xf32, #tpu.memory_space<vmem>>, vector<8x128xf32>,
    return
  }
  func.func @transform_0(%arg0: i32) -> (i32, i32) {
    %c0_i32 = arith.constant 0 : i32
    %c0_i32_0 = arith.constant 0 : i32
    return %arg0, %c0_i32 : i32, i32
  }
  func.func @transform_1(%arg0: i32) -> (i32, i32) {
    %c0_i32 = arith.constant 0 : i32
    %c0_i32_0 = arith.constant 0 : i32
    %c0_i32_1 = arith.constant 0 : i32
    return %c0_i32, %c0_i32_0 : i32, i32
  }
  func.func @transform_2(%arg0: i32) -> (i32, i32) {
    %c0_i32 = arith.constant 0 : i32
    %c0_i32_0 = arith.constant 0 : i32
    %c0_i32_1 = arith.constant 0 : i32
    return %c0_i32, %c0_i32_0 : i32, i32
  }
  func.func @transform_3(%arg0: i32) -> (i32, i32) {
    %c0_i32 = arith.constant 0 : i32
    %c0_i32_0 = arith.constant 0 : i32
    %c0_i32_1 = arith.constant 0 : i32
    return %c0_i32, %c0_i32_0 : i32, i32
  }
  func.func @transform_4(%arg0: i32) -> (i32, i32) {
    %c0_i32 = arith.constant 0 : i32
    %c0_i32_0 = arith.constant 0 : i32
    %c0_i32_1 = arith.constant 0 : i32
    return %c0_i32, %c0_i32_0 : i32, i32
  }
  func.func @transform_5(%arg0: i32) -> (i32, i32) {
    %c0_i32 = arith.constant 0 : i32
    %c0_i32_0 = arith.constant 0 : i32
    %c0_i32_1 = arith.constant 0 : i32
    return %c0_i32, %c0_i32_0 : i32, i32
  }
  func.func @transform_6(%arg0: i32) -> (i32, i32) {
    %c0_i32 = arith.constant 0 : i32
    %c0_i32_0 = arith.constant 0 : i32
    %c0_i32_1 = arith.constant 0 : i32
    return %c0_i32, %c0_i32_0 : i32, i32
  }
  func.func @transform_7(%arg0: i32) -> (i32, i32) {
    %c0_i32 = arith.constant 0 : i32
    %c0_i32_0 = arith.constant 0 : i32
    %c0_i32_1 = arith.constant 0 : i32
    return %c0_i32, %c0_i32_0 : i32, i32
  }
  func.func @transform_8(%arg0: i32) -> (i32, i32) {
    %c0_i32 = arith.constant 0 : i32
    %c0_i32_0 = arith.constant 0 : i32
    %c0_i32_1 = arith.constant 0 : i32
    return %c0_i32, %c0_i32_0 : i32, i32
  }
  func.func @transform_9(%arg0: i32) -> (i32, i32) {
    %c0_i32 = arith.constant 0 : i32
    %c0_i32_0 = arith.constant 0 : i32
    return %arg0, %c0_i32 : i32, i32
  }
}

module attributes {stable_mosaic.version = 11 : i64} {
  func.func @mlp_kernel(%arg0: i32, %arg1: memref<8x128xbf16, #tpu.memory_space<vmem>>, %arg2: memref<128x128xbf16, #tpu.memory_space<vmem>>, %arg3: memref<1x128xf32, #tpu.memory_space<vmem>>, %arg4: memref<128x128xbf16, #tpu.memory_space<vmem>>, %arg5: memref<1x128xf32, #tpu.memory_space<vmem>>, %arg6: memref<1x128xf32, #tpu.memory_space<vmem>>, %arg7: memref<1x128xf32, #tpu.memory_space<vmem>>, %arg8: memref<128x128xbf16, #tpu.memory_space<vmem>>, %arg9: memref<1x128xf32, #tpu.memory_space<vmem>>, %arg10: memref<8x128xf32, #tpu.memory_space<vmem>>) attributes {dimension_semantics = [#tpu.dimension_semantics<parallel>], iteration_bounds = array<i64: 1>, scalar_prefetch = 0 : i64, scratch_operands = 0 : i64, tpu.core_type = #tpu.core_type<tc>, window_params = [{transform_indices = @transform_0, window_bounds = array<i64: 8, 128>}, {pipeline_mode = #tpu.pipeline_mode<synchronous>, transform_indices = @transform_1, window_bounds = array<i64: 128, 128>}, {pipeline_mode = #tpu.pipeline_mode<synchronous>, transform_indices = @transform_2, window_bounds = array<i64: 1, 128>}, {pipeline_mode = #tpu.pipeline_mode<synchronous>, transform_indices = @transform_3, window_bounds = array<i64: 128, 128>}, {pipeline_mode = #tpu.pipeline_mode<synchronous>, transform_indices = @transform_4, window_bounds = array<i64: 1, 128>}, {pipeline_mode = #tpu.pipeline_mode<synchronous>, transform_indices = @transform_5, window_bounds = array<i64: 1, 128>}, {pipeline_mode = #tpu.pipeline_mode<synchronous>, transform_indices = @transform_6, window_bounds = array<i64: 1, 128>}, {pipeline_mode = #tpu.pipeline_mode<synchronous>, transform_indices = @transform_7, window_bounds = array<i64: 128, 128>}, {pipeline_mode = #tpu.pipeline_mode<synchronous>, transform_indices = @transform_8, window_bounds = array<i64: 1, 128>}, {transform_indices = @transform_9, window_bounds = array<i64: 8, 128>}]} {
    %c0 = arith.constant 0 : index
    %c0_0 = arith.constant 0 : index
    %0 = vector.load %arg1[%c0, %c0_0] : memref<8x128xbf16, #tpu.memory_space<vmem>>, vector<8x128xbf16>
    %c0_1 = arith.constant 0 : index
    %c0_2 = arith.constant 0 : index
    %1 = vector.load %arg6[%c0_1, %c0_2] : memref<1x128xf32, #tpu.memory_space<vmem>>, vector<1x128xf32>
    %c0_3 = arith.constant 0 : index
    %c0_4 = arith.constant 0 : index
    %2 = vector.load %arg7[%c0_3, %c0_4] : memref<1x128xf32, #tpu.memory_space<vmem>>, vector<1x128xf32>
    %c0_5 = arith.constant 0 : index
    %c0_6 = arith.constant 0 : index
    %3 = vector.load %arg4[%c0_5, %c0_6] : memref<128x128xbf16, #tpu.memory_space<vmem>>, vector<128x128xbf16>
    %c0_7 = arith.constant 0 : index
    %c0_8 = arith.constant 0 : index
    %4 = vector.load %arg5[%c0_7, %c0_8] : memref<1x128xf32, #tpu.memory_space<vmem>>, vector<1x128xf32>
    %c0_9 = arith.constant 0 : index
    %c0_10 = arith.constant 0 : index
    %5 = vector.load %arg2[%c0_9, %c0_10] : memref<128x128xbf16, #tpu.memory_space<vmem>>, vector<128x128xbf16>
    %cst = arith.constant dense<0.000000e+00> : vector<8x128xf32>
    %6 = tpu.matmul %0, %5, %cst {dimension_numbers = #tpu.dot_dimension_numbers<[1], [0], [0], [1], [0, 0, 1, 1], [], []>} : vector<8x128xbf16>, vector<128x128xbf16>, vector<8x128xf32> -> vector<8x128xf32>
    %c0_11 = arith.constant 0 : index
    %c0_12 = arith.constant 0 : index
    %7 = vector.load %arg3[%c0_11, %c0_12] : memref<1x128xf32, #tpu.memory_space<vmem>>, vector<1x128xf32>
    %8 = vector.broadcast %7 : vector<1x128xf32> to vector<8x128xf32>
    %9 = arith.addf %6, %8 : vector<8x128xf32>
    %10 = arith.truncf %9 : vector<8x128xf32> to vector<8x128xbf16>
    %cst_13 = arith.constant dense<0.000000e+00> : vector<8x128xf32>
    %11 = tpu.matmul %10, %3, %cst_13 {dimension_numbers = #tpu.dot_dimension_numbers<[1], [0], [0], [1], [0, 0, 1, 1], [], []>} : vector<8x128xbf16>, vector<128x128xbf16>, vector<8x128xf32> -> vector<8x128xf32>
    %12 = vector.broadcast %4 : vector<1x128xf32> to vector<8x128xf32>
    %13 = arith.addf %11, %12 : vector<8x128xf32>
    %14 = tpu.iota {dimensions = array<i32: 1>} : vector<1x128xi32>
    %c32_i32 = arith.constant 32 : i32
    %15 = vector.broadcast %c32_i32 : i32 to vector<1x128xi32>
    %16 = arith.cmpi slt, %14, %15 : vector<1x128xi32>
    %cst_14 = arith.constant 0.000000e+00 : f32
    %17 = vector.shape_cast %16 : vector<1x128xi1> to vector<1x128xi1>
    %18 = vector.broadcast %17 : vector<1x128xi1> to vector<8x128xi1>
    %19 = vector.broadcast %cst_14 : f32 to vector<8x128xf32>
    %20 = arith.select %18, %13, %19 : vector<8x128xi1>, vector<8x128xf32>
    %cst_15 = arith.constant dense<0.000000e+00> : vector<8xf32>
    %21 = vector.multi_reduction <add>, %20, %cst_15 [1] : vector<8x128xf32> to vector<8xf32>
    %22 = vector.shape_cast %21 : vector<8xf32> to vector<8x1xf32>
    %cst_16 = arith.constant 3.125000e-02 : f32
    %23 = vector.broadcast %cst_16 : f32 to vector<8x1xf32>
    %24 = arith.mulf %22, %23 : vector<8x1xf32>
    %25 = vector.broadcast %24 : vector<8x1xf32> to vector<8x128xf32>
    %26 = arith.subf %20, %25 : vector<8x128xf32>
    %cst_17 = arith.constant 0.000000e+00 : f32
    %27 = vector.shape_cast %16 : vector<1x128xi1> to vector<1x128xi1>
    %28 = vector.broadcast %27 : vector<1x128xi1> to vector<8x128xi1>
    %29 = vector.broadcast %cst_17 : f32 to vector<8x128xf32>
    %30 = arith.select %28, %26, %29 : vector<8x128xi1>, vector<8x128xf32>
    %31 = arith.mulf %30, %30 : vector<8x128xf32>
    %cst_18 = arith.constant dense<0.000000e+00> : vector<8xf32>
    %32 = vector.multi_reduction <add>, %31, %cst_18 [1] : vector<8x128xf32> to vector<8xf32>
    %33 = vector.shape_cast %32 : vector<8xf32> to vector<8x1xf32>
    %cst_19 = arith.constant 3.125000e-02 : f32
    %34 = vector.broadcast %cst_19 : f32 to vector<8x1xf32>
    %35 = arith.mulf %33, %34 : vector<8x1xf32>
    %cst_20 = arith.constant 9.99999974E-6 : f32
    %36 = vector.broadcast %cst_20 : f32 to vector<8x1xf32>
    %37 = arith.addf %35, %36 : vector<8x1xf32>
    %38 = math.rsqrt %37 : vector<8x1xf32>
    %39 = vector.broadcast %38 : vector<8x1xf32> to vector<8x128xf32>
    %40 = arith.mulf %30, %39 : vector<8x128xf32>
    %41 = vector.broadcast %1 : vector<1x128xf32> to vector<8x128xf32>
    %42 = arith.mulf %40, %41 : vector<8x128xf32>
    %43 = vector.broadcast %2 : vector<1x128xf32> to vector<8x128xf32>
    %44 = arith.addf %42, %43 : vector<8x128xf32>
    %cst_21 = arith.constant 0.000000e+00 : f32
    %45 = vector.broadcast %cst_21 : f32 to vector<8x128xf32>
    %46 = arith.maximumf %44, %45 : vector<8x128xf32>
    %47 = arith.truncf %46 : vector<8x128xf32> to vector<8x128xbf16>
    %cst_22 = arith.constant dense<0.000000e+00> : vector<8x128xf32>
    %48 = tpu.matmul %47, %3, %cst_22 {dimension_numbers = #tpu.dot_dimension_numbers<[1], [0], [0], [1], [0, 0, 1, 1], [], []>} : vector<8x128xbf16>, vector<128x128xbf16>, vector<8x128xf32> -> vector<8x128xf32>
    %49 = vector.broadcast %4 : vector<1x128xf32> to vector<8x128xf32>
    %50 = arith.addf %48, %49 : vector<8x128xf32>
    %51 = arith.addf %50, %13 : vector<8x128xf32>
    %52 = tpu.iota {dimensions = array<i32: 1>} : vector<1x128xi32>
    %c32_i32_23 = arith.constant 32 : i32
    %53 = vector.broadcast %c32_i32_23 : i32 to vector<1x128xi32>
    %54 = arith.cmpi slt, %52, %53 : vector<1x128xi32>
    %cst_24 = arith.constant 0.000000e+00 : f32
    %55 = vector.shape_cast %54 : vector<1x128xi1> to vector<1x128xi1>
    %56 = vector.broadcast %55 : vector<1x128xi1> to vector<8x128xi1>
    %57 = vector.broadcast %cst_24 : f32 to vector<8x128xf32>
    %58 = arith.select %56, %51, %57 : vector<8x128xi1>, vector<8x128xf32>
    %cst_25 = arith.constant dense<0.000000e+00> : vector<8xf32>
    %59 = vector.multi_reduction <add>, %58, %cst_25 [1] : vector<8x128xf32> to vector<8xf32>
    %60 = vector.shape_cast %59 : vector<8xf32> to vector<8x1xf32>
    %cst_26 = arith.constant 3.125000e-02 : f32
    %61 = vector.broadcast %cst_26 : f32 to vector<8x1xf32>
    %62 = arith.mulf %60, %61 : vector<8x1xf32>
    %63 = vector.broadcast %62 : vector<8x1xf32> to vector<8x128xf32>
    %64 = arith.subf %58, %63 : vector<8x128xf32>
    %cst_27 = arith.constant 0.000000e+00 : f32
    %65 = vector.shape_cast %54 : vector<1x128xi1> to vector<1x128xi1>
    %66 = vector.broadcast %65 : vector<1x128xi1> to vector<8x128xi1>
    %67 = vector.broadcast %cst_27 : f32 to vector<8x128xf32>
    %68 = arith.select %66, %64, %67 : vector<8x128xi1>, vector<8x128xf32>
    %69 = arith.mulf %68, %68 : vector<8x128xf32>
    %cst_28 = arith.constant dense<0.000000e+00> : vector<8xf32>
    %70 = vector.multi_reduction <add>, %69, %cst_28 [1] : vector<8x128xf32> to vector<8xf32>
    %71 = vector.shape_cast %70 : vector<8xf32> to vector<8x1xf32>
    %cst_29 = arith.constant 3.125000e-02 : f32
    %72 = vector.broadcast %cst_29 : f32 to vector<8x1xf32>
    %73 = arith.mulf %71, %72 : vector<8x1xf32>
    %cst_30 = arith.constant 9.99999974E-6 : f32
    %74 = vector.broadcast %cst_30 : f32 to vector<8x1xf32>
    %75 = arith.addf %73, %74 : vector<8x1xf32>
    %76 = math.rsqrt %75 : vector<8x1xf32>
    %77 = vector.broadcast %76 : vector<8x1xf32> to vector<8x128xf32>
    %78 = arith.mulf %68, %77 : vector<8x128xf32>
    %79 = vector.broadcast %1 : vector<1x128xf32> to vector<8x128xf32>
    %80 = arith.mulf %78, %79 : vector<8x128xf32>
    %81 = vector.broadcast %2 : vector<1x128xf32> to vector<8x128xf32>
    %82 = arith.addf %80, %81 : vector<8x128xf32>
    %cst_31 = arith.constant 0.000000e+00 : f32
    %83 = vector.broadcast %cst_31 : f32 to vector<8x128xf32>
    %84 = arith.maximumf %82, %83 : vector<8x128xf32>
    %85 = arith.truncf %84 : vector<8x128xf32> to vector<8x128xbf16>
    %c0_32 = arith.constant 0 : index
    %c0_33 = arith.constant 0 : index
    %86 = vector.load %arg8[%c0_32, %c0_33] : memref<128x128xbf16, #tpu.memory_space<vmem>>, vector<128x128xbf16>
    %cst_34 = arith.constant dense<0.000000e+00> : vector<8x128xf32>
    %87 = tpu.matmul %85, %86, %cst_34 {dimension_numbers = #tpu.dot_dimension_numbers<[1], [0], [0], [1], [0, 0, 1, 1], [], []>} : vector<8x128xbf16>, vector<128x128xbf16>, vector<8x128xf32> -> vector<8x128xf32>
    %c0_35 = arith.constant 0 : index
    %c0_36 = arith.constant 0 : index
    %88 = vector.load %arg9[%c0_35, %c0_36] : memref<1x128xf32, #tpu.memory_space<vmem>>, vector<1x128xf32>
    %89 = vector.broadcast %88 : vector<1x128xf32> to vector<8x128xf32>
    %90 = arith.addf %87, %89 : vector<8x128xf32>
    %c0_37 = arith.constant 0 : index
    %c0_38 = arith.constant 0 : index
    %91 = vector.load %arg10[%c0_37, %c0_38] : memref<8x128xf32, #tpu.memory_space<vmem>>, vector<8x128xf32>
    tpu.vector_store %arg10[%c0_37, %c0_38], %90 {strides = array<i32>} : memref<8x128xf32, #tpu.memory_space<vmem>>, vector<8x128xf32>,
    return
  }
  func.func @transform_0(%arg0: i32) -> (i32, i32) {
    %c0_i32 = arith.constant 0 : i32
    %c0_i32_0 = arith.constant 0 : i32
    return %arg0, %c0_i32 : i32, i32
  }
  func.func @transform_1(%arg0: i32) -> (i32, i32) {
    %c0_i32 = arith.constant 0 : i32
    %c0_i32_0 = arith.constant 0 : i32
    %c0_i32_1 = arith.constant 0 : i32
    return %c0_i32, %c0_i32_0 : i32, i32
  }
  func.func @transform_2(%arg0: i32) -> (i32, i32) {
    %c0_i32 = arith.constant 0 : i32
    %c0_i32_0 = arith.constant 0 : i32
    %c0_i32_1 = arith.constant 0 : i32
    return %c0_i32, %c0_i32_0 : i32, i32
  }
  func.func @transform_3(%arg0: i32) -> (i32, i32) {
    %c0_i32 = arith.constant 0 : i32
    %c0_i32_0 = arith.constant 0 : i32
    %c0_i32_1 = arith.constant 0 : i32
    return %c0_i32, %c0_i32_0 : i32, i32
  }
  func.func @transform_4(%arg0: i32) -> (i32, i32) {
    %c0_i32 = arith.constant 0 : i32
    %c0_i32_0 = arith.constant 0 : i32
    %c0_i32_1 = arith.constant 0 : i32
    return %c0_i32, %c0_i32_0 : i32, i32
  }
  func.func @transform_5(%arg0: i32) -> (i32, i32) {
    %c0_i32 = arith.constant 0 : i32
    %c0_i32_0 = arith.constant 0 : i32
    %c0_i32_1 = arith.constant 0 : i32
    return %c0_i32, %c0_i32_0 : i32, i32
  }
  func.func @transform_6(%arg0: i32) -> (i32, i32) {
    %c0_i32 = arith.constant 0 : i32
    %c0_i32_0 = arith.constant 0 : i32
    %c0_i32_1 = arith.constant 0 : i32
    return %c0_i32, %c0_i32_0 : i32, i32
  }
  func.func @transform_7(%arg0: i32) -> (i32, i32) {
    %c0_i32 = arith.constant 0 : i32
    %c0_i32_0 = arith.constant 0 : i32
    %c0_i32_1 = arith.constant 0 : i32
    return %c0_i32, %c0_i32_0 : i32, i32
  }
  func.func @transform_8(%arg0: i32) -> (i32, i32) {
    %c0_i32 = arith.constant 0 : i32
    %c0_i32_0 = arith.constant 0 : i32
    %c0_i32_1 = arith.constant 0 : i32
    return %c0_i32, %c0_i32_0 : i32, i32
  }
  func.func @transform_9(%arg0: i32) -> (i32, i32) {
    %c0_i32 = arith.constant 0 : i32
    %c0_i32_0 = arith.constant 0 : i32
    return %arg0, %c0_i32 : i32, i32
  }
}

</mosaic_0001>

<bundles_post_ra>
// kernel: mlp_forward.1
= control target key start
LH: loop header
LB: loop body
LE: loop exit
PB: predicated region body
PF: predicated region fallthrough
CT: control target
= control target key end

     0   :  { %s678_s0 = inlined_call_operand.vmem [shape: bf16[8,128], index: 0, kind: input, shape index: {}]   ;;  %s679_s1 = inlined_call_operand.vmem [shape: bf16[128,128], index: 1, kind: input, shape index: {}]   ;;  %s680_s2 = inlined_call_operand.vmem [shape: f32[1,128], index: 2, kind: input, shape index: {}]   ;;  %s681_s3 = inlined_call_operand.vmem [shape: bf16[128,128], index: 3, kind: input, shape index: {}]   ;;  %s682_s4 = inlined_call_operand.vmem [shape: f32[1,128], index: 4, kind: input, shape index: {}]   ;;  %s683_s5 = inlined_call_operand.vmem [shape: f32[1,128], index: 5, kind: input, shape index: {}]   ;;  %s684_s6 = inlined_call_operand.vmem [shape: f32[1,128], index: 6, kind: input, shape index: {}]   ;;  %s685_s7 = inlined_call_operand.vmem [shape: bf16[128,128], index: 7, kind: input, shape index: {}]   ;;  %s686_s8 = inlined_call_operand.vmem [shape: f32[1,128], index: 8, kind: input, shape index: {}]   ;;  %s687_s9 = inlined_call_operand.hbm [shape: f32[8,128], index: 9, kind: output, shape index: {}]  }
   0x1   :  { %v485_v0 = vld [vmem:[%s679_s1 + $0x38] sm:$0xff]  ;;  %v484_v1 = vld [vmem:[%s679_s1 + $0x30] sm:$0xff]  ;;  %v483_v3 = vld [vmem:[%s679_s1 + $0x28] sm:$0xff] }
   0x2   :  { %121 = vmatpush.bf16.msra.mxu0 %v485_v0  ;;  %v477_v2 = vld [vmem:[%s681_s3 + $0x38] sm:$0xff]  ;;  %v476_v4 = vld [vmem:[%s681_s3 + $0x30] sm:$0xff] }
   0x3   :  { %186 = vmatpush.bf16.msra.mxu1 %v477_v2  ;;  %236 = vmatpush.bf16.msra.mxu2 %v477_v2 }
   0x6   :  { %122 = vmatpush.bf16.msra.mxu0 %v484_v1 }
   0x7   :  { %14 = vsyncpa [#allocation3], 0  ;;  %187 = vmatpush.bf16.msra.mxu1 %v476_v4  ;;  %v475_v5 = vld [vmem:[%s681_s3 + $0x28] sm:$0xff]  ;;  %237 = vmatpush.bf16.msra.mxu2 %v476_v4  ;;  %v482_v6 = vld [vmem:[%s679_s1 + $0x20] sm:$0xff]  ;;  %v199_v22 = vlaneseq  ;;  %s530_s19 = smov [#allocation2]   ;;  %s365_s23 = sshll.u32 %s687_s9, 4  ;;  %s366_s23 = int_to_ptr.hbm [resolvable:$true] %s365_s23 }
   0x8   :  { %v474_v7 = vld [vmem:[%s681_s3 + $0x20] sm:$0xff]  ;;  %v481_v8 = vld [vmem:[%s679_s1 + $0x18] sm:$0xff]  ;;  %v480_v10 = vld [vmem:[%s679_s1 + $0x10] sm:$0xff]  ;;  %s363_s20 = sshll.u32 %s530_s19, 4  ;;  %s364_s20 = int_to_ptr.vmem [resolvable:$true] %s363_s20 }
   0x9   :  { %v473_v9 = vld [vmem:[%s681_s3 + $0x18] sm:$0xff]  ;;  %v472_v11 = vld [vmem:[%s681_s3 + $0x10] sm:$0xff]  ;;  %v479_v12 = vld [vmem:[%s679_s1 + $0x8] sm:$0xff]  ;;  %v200_v23 = vand.u32 127, %v199_v22 }
   0xa   :  { %123 = vmatpush.bf16.msra.mxu0 %v483_v3  ;;  %v471_v13 = vld [vmem:[%s681_s3 + $0x8] sm:$0xff]  ;;  %v478_v14 = vld [vmem:[%s679_s1] sm:$0xff]  ;;  %v493_v61 = vld [vmem:[%s685_s7 + $0x38] sm:$0xff] }
   0xb   :  { %188 = vmatpush.bf16.msra.mxu1 %v475_v5  ;;  %238 = vmatpush.bf16.msra.mxu2 %v475_v5  ;;  %v33_v15 = vld [vmem:[%s678_s0] sm:$0xf]  ;;  %vm201_vm0 = vcmp.lt.s32.totalorder %v200_v23, 32  ;;  %v492_v62 = vld [vmem:[%s685_s7 + $0x30] sm:$0xff]  ;;  %v491_v63 = vld [vmem:[%s685_s7 + $0x28] sm:$0xff] }
   0xc   :  { %v470_v16 = vld [vmem:[%s681_s3] sm:$0xff]  ;;  %344 = vmatpush.bf16.msra.mxu3 %v493_v61  ;;  %v489_v1 = vld [vmem:[%s685_s7 + $0x18] sm:$0xff]  ;;  %v488_v2 = vld [vmem:[%s685_s7 + $0x10] sm:$0xff] }
   0xd   :  { %v495_v17 = vld [vmem:[%s680_s2] ss:$0 sm:$0xff]  ;;  %v487_v3 = vld [vmem:[%s685_s7 + $0x8] sm:$0xff] }
   0xe   :  { %124 = vmatpush.bf16.msra.mxu0 %v482_v6  ;;  %v496_v24 = vld [vmem:[%s682_s4] ss:$0 sm:$0xff] }
   0xf   :  { %189 = vmatpush.bf16.msra.mxu1 %v474_v7  ;;  %239 = vmatpush.bf16.msra.mxu2 %v474_v7  ;;  %v497_v43 = vld [vmem:[%s683_s5] ss:$0 sm:$0xff] }
  0x10   :  { %v498_v46 = vld [vmem:[%s684_s6] ss:$0 sm:$0xff]  ;;  %345 = vmatpush.bf16.msra.mxu3 %v492_v62 }
  0x11   :  { %v490_v0 = vld [vmem:[%s685_s7 + $0x20] sm:$0xff] }
  0x12   :  { %125 = vmatpush.bf16.msra.mxu0 %v481_v8  ;;  %v486_v4 = vld [vmem:[%s685_s7] sm:$0xff] }
  0x13   :  { %190 = vmatpush.bf16.msra.mxu1 %v473_v9  ;;  %240 = vmatpush.bf16.msra.mxu2 %v473_v9 }
  0x14   :  { %346 = vmatpush.bf16.msra.mxu3 %v491_v63 }
  0x16   :  { %126 = vmatpush.bf16.msra.mxu0 %v480_v10 }
  0x17   :  { %191 = vmatpush.bf16.msra.mxu1 %v472_v11  ;;  %241 = vmatpush.bf16.msra.mxu2 %v472_v11 }
  0x18   :  { %347 = vmatpush.bf16.msra.mxu3 %v490_v0 }
  0x1a   :  { %127 = vmatpush.bf16.msra.mxu0 %v479_v12 }
  0x1b   :  { %192 = vmatpush.bf16.msra.mxu1 %v471_v13  ;;  %242 = vmatpush.bf16.msra.mxu2 %v471_v13 }
  0x1c   :  { %348 = vmatpush.bf16.msra.mxu3 %v489_v1 }
  0x1e   :  { %128 = vmatpush.bf16.msra.mxu0 %v478_v14 }
  0x1f   :  { %193 = vmatpush.bf16.msra.mxu1 %v470_v16  ;;  %243 = vmatpush.bf16.msra.mxu2 %v470_v16 }
  0x20   :  { %349 = vmatpush.bf16.msra.mxu3 %v488_v2 }
  0x21   :  { %129 = vmatmul.bf16.vlgmr.msra.gmra.mxu0 %v33_v15 }
  0x24   :  { %350 = vmatpush.bf16.msra.mxu3 %v487_v3 }
  0x28   :  { %351 = vmatpush.bf16.msra.mxu3 %v486_v4 }
  0x9e   :  { %v130_v18 = vpop.f32.mrf.mxu0 }
  0x9f   :  { %v131_v19 = vadd.f32 %v495_v17, %v130_v18 }
  0xa1   :  { %v134_v20 = vpack.c.bf16 %v131_v19, %v131_v19 }
  0xa3   :  { %194 = vmatmul.bf16.vlgmr.msra.gmra.mxu1 %v134_v20  ;;  %v499_v20 = vld [vmem:[%s686_s8] ss:$0 sm:$0xff] }
  0xa6   :  { %v132_v21 = vpop.f32.mrf.mxu0 }
 0x120   :  { %v195_v25 = vpop.f32.mrf.mxu1 }
 0x121   :  { %v196_v26 = vadd.f32 %v496_v24, %v195_v25 }
 0x123   :  { %v204_v27 = vsel %vm201_vm0, %v196_v26, 0.0 }
 0x124   :  { %205 = vadd.xlane.f32.xlu0 %v204_v27 }
 0x128   :  { %v197_v28 = vpop.f32.mrf.mxu1 }
 0x197   :  { %v206_v29 = vpop.xlane.xlu0 %205 }
 0x198   :  { %v207_v30 = vmul.f32 0.03125, %v206_v29 }
 0x19a   :  { %v208_v31 = vsub.f32 %v204_v27, %v207_v30 }
 0x19c   :  { %v209_v32 = vsel %vm201_vm0, %v208_v31, 0.0 }
 0x19d   :  { %v210_v33 = vmul.f32 %v209_v32, %v209_v32 }
 0x19f   :  { %211 = vadd.xlane.f32.xlu0 %v210_v33 }
 0x212   :  { %v212_v34 = vpop.xlane.xlu0 %211 }
 0x213   :  { %v213_v35 = vmul.f32 0.03125, %v212_v34 }
 0x215   :  { %v214_v36 = vadd.f32 1e-05, %v213_v35 }
 0x217   :  { %500 = vrsqrt.f32 %v214_v36  ;;  %vm221_vm2 = vweird.f32 %v214_v36 }
 0x21d   :  { %v501_v37 = vpop.eup %500 }
 0x21e   :  { %v216_v38 = vmul.f32 %v501_v37, %v214_v36  ;;  %vm222_vm1 = vweird.f32 %v501_v37 }
 0x21f   :  { %vm223_vm3 = vmor %vm221_vm2, %vm222_vm1 }
 0x220   :  { %v217_v39 = vmul.f32 %v501_v37, %v216_v38 }
 0x222   :  { %v218_v40 = vmul.f32 0.5, %v217_v39 }
 0x224   :  { %v219_v41 = vsub.f32 1.5, %v218_v40 }
 0x226   :  { %v220_v42 = vmul.f32 %v501_v37, %v219_v41 }
 0x228   :  { %v224_v44 = vsel %vm223_vm3, %v501_v37, %v220_v42 }
 0x229   :  { %v225_v45 = vmul.f32 %v224_v44, %v209_v32 }
 0x22b   :  { %v229_v47 = vmul.f32 %v497_v43, %v225_v45 }
 0x22d   :  { %v233_v48 = vadd.f32 %v498_v46, %v229_v47 }
 0x22f   :  { %v234_v49 = vmax.f32 %v233_v48, 0.0 }
 0x231   :  { %v235_v50 = vpack.c.bf16 %v234_v49, %v234_v49 }
 0x233   :  { %244 = vmatmul.bf16.vlgmr.msra.gmra.mxu2 %v235_v50 }
 0x2b6   :  { %v245_v51 = vpop.f32.mrf.mxu2 }
 0x2b7   :  { %v246_v52 = vadd.f32 %v496_v24, %v245_v51 }
 0x2b9   :  { %v249_v53 = vadd.f32 %v246_v52, %v196_v26 }
 0x2bb   :  { %v250_v54 = vsel %vm201_vm0, %v249_v53, 0.0 }
 0x2bc   :  { %251 = vadd.xlane.f32.xlu1 %v250_v54 }
 0x2be   :  { %v247_v55 = vpop.f32.mrf.mxu2 }
 0x32f   :  { %v252_v56 = vpop.xlane.xlu1 %251 }
 0x330   :  { %v253_v57 = vmul.f32 0.03125, %v252_v56 }
 0x332   :  { %v254_v58 = vsub.f32 %v250_v54, %v253_v57 }
 0x334   :  { %v255_v59 = vsel %vm201_vm0, %v254_v58, 0.0 }
 0x335   :  { %v256_v60 = vmul.f32 %v255_v59, %v255_v59 }
 0x337   :  { %257 = vadd.xlane.f32.xlu1 %v256_v60 }
 0x3aa   :  { %v258_v5 = vpop.xlane.xlu1 %257 }
 0x3ab   :  { %v259_v6 = vmul.f32 0.03125, %v258_v5 }
 0x3ad   :  { %v260_v7 = vadd.f32 1e-05, %v259_v6 }
 0x3af   :  { %502 = vrsqrt.f32 %v260_v7  ;;  %vm267_vm5 = vweird.f32 %v260_v7 }
 0x3b5   :  { %v503_v8 = vpop.eup %502 }
 0x3b6   :  { %v262_v9 = vmul.f32 %v503_v8, %v260_v7  ;;  %vm268_vm4 = vweird.f32 %v503_v8 }
 0x3b7   :  { %vm269_vm6 = vmor %vm267_vm5, %vm268_vm4 }
 0x3b8   :  { %v263_v10 = vmul.f32 %v503_v8, %v262_v9 }
 0x3ba   :  { %v264_v11 = vmul.f32 0.5, %v263_v10 }
 0x3bc   :  { %v265_v12 = vsub.f32 1.5, %v264_v11 }
 0x3be   :  { %v266_v13 = vmul.f32 %v503_v8, %v265_v12 }
 0x3c0   :  { %v270_v14 = vsel %vm269_vm6, %v503_v8, %v266_v13 }
 0x3c1   :  { %v271_v15 = vmul.f32 %v270_v14, %v255_v59 }
 0x3c3   :  { %v272_v16 = vmul.f32 %v497_v43, %v271_v15 }
 0x3c5   :  { %v273_v17 = vadd.f32 %v498_v46, %v272_v16 }
 0x3c7   :  { %v274_v18 = vmax.f32 %v273_v17, 0.0 }
 0x3c9   :  { %v275_v19 = vpack.c.bf16 %v274_v18, %v274_v18 }
 0x3cb   :  { %352 = vmatmul.bf16.vlgmr.msra.gmra.mxu3 %v275_v19 }
 0x44e   :  { %v353_v21 = vpop.f32.mrf.mxu3 }
 0x44f   :  { %v354_v22 = vadd.f32 %v499_v20, %v353_v21 }
 0x451   :  { %357 = vst [vmem:[#allocation2] sm:$0xff] %v354_v22 }
 0x452   :  { %368 = dma.vmem_to_hbm [thread:$0]  %s364_s20, 128, %s366_s23, [#allocation3]  }
 0x456   :  { %v355_v23 = vpop.f32.mrf.mxu3 }
 0x457   :  { %528 = dma.done.wait [#allocation3], 128  }
 0x458   :  { %529 = vsyncadd [#allocation3], 4294967168 }
 0x459   :  { %373 = vsyncpa [#allocation3], 1 }

// kernel: mlp_forward.1
= control target key start
LH: loop header
LB: loop body
LE: loop exit
PB: predicated region body
PF: predicated region fallthrough
CT: control target
= control target key end

     0   :  { %s678_s0 = inlined_call_operand.vmem [shape: bf16[8,128], index: 0, kind: input, shape index: {}]   ;;  %s679_s1 = inlined_call_operand.vmem [shape: bf16[128,128], index: 1, kind: input, shape index: {}]   ;;  %s680_s2 = inlined_call_operand.vmem [shape: f32[1,128], index: 2, kind: input, shape index: {}]   ;;  %s681_s3 = inlined_call_operand.vmem [shape: bf16[128,128], index: 3, kind: input, shape index: {}]   ;;  %s682_s4 = inlined_call_operand.vmem [shape: f32[1,128], index: 4, kind: input, shape index: {}]   ;;  %s683_s5 = inlined_call_operand.vmem [shape: f32[1,128], index: 5, kind: input, shape index: {}]   ;;  %s684_s6 = inlined_call_operand.vmem [shape: f32[1,128], index: 6, kind: input, shape index: {}]   ;;  %s685_s7 = inlined_call_operand.vmem [shape: bf16[128,128], index: 7, kind: input, shape index: {}]   ;;  %s686_s8 = inlined_call_operand.vmem [shape: f32[1,128], index: 8, kind: input, shape index: {}]   ;;  %s687_s9 = inlined_call_operand.hbm [shape: f32[8,128], index: 9, kind: output, shape index: {}]  }
   0x1   :  { %v485_v0 = vld [vmem:[%s679_s1 + $0x38] sm:$0xff]  ;;  %v484_v1 = vld [vmem:[%s679_s1 + $0x30] sm:$0xff]  ;;  %v483_v3 = vld [vmem:[%s679_s1 + $0x28] sm:$0xff] }
   0x2   :  { %121 = vmatpush.bf16.msra.mxu0 %v485_v0  ;;  %v477_v2 = vld [vmem:[%s681_s3 + $0x38] sm:$0xff]  ;;  %v476_v4 = vld [vmem:[%s681_s3 + $0x30] sm:$0xff] }
   0x3   :  { %186 = vmatpush.bf16.msra.mxu1 %v477_v2  ;;  %236 = vmatpush.bf16.msra.mxu2 %v477_v2 }
   0x6   :  { %122 = vmatpush.bf16.msra.mxu0 %v484_v1 }
   0x7   :  { %14 = vsyncpa [#allocation3], 0  ;;  %187 = vmatpush.bf16.msra.mxu1 %v476_v4  ;;  %v475_v5 = vld [vmem:[%s681_s3 + $0x28] sm:$0xff]  ;;  %237 = vmatpush.bf16.msra.mxu2 %v476_v4  ;;  %v482_v6 = vld [vmem:[%s679_s1 + $0x20] sm:$0xff]  ;;  %v199_v22 = vlaneseq  ;;  %s530_s19 = smov [#allocation2]   ;;  %s365_s23 = sshll.u32 %s687_s9, 4  ;;  %s366_s23 = int_to_ptr.hbm [resolvable:$true] %s365_s23 }
   0x8   :  { %v474_v7 = vld [vmem:[%s681_s3 + $0x20] sm:$0xff]  ;;  %v481_v8 = vld [vmem:[%s679_s1 + $0x18] sm:$0xff]  ;;  %v480_v10 = vld [vmem:[%s679_s1 + $0x10] sm:$0xff]  ;;  %s363_s20 = sshll.u32 %s530_s19, 4  ;;  %s364_s20 = int_to_ptr.vmem [resolvable:$true] %s363_s20 }
   0x9   :  { %v473_v9 = vld [vmem:[%s681_s3 + $0x18] sm:$0xff]  ;;  %v472_v11 = vld [vmem:[%s681_s3 + $0x10] sm:$0xff]  ;;  %v479_v12 = vld [vmem:[%s679_s1 + $0x8] sm:$0xff]  ;;  %v200_v23 = vand.u32 127, %v199_v22 }
   0xa   :  { %123 = vmatpush.bf16.msra.mxu0 %v483_v3  ;;  %v471_v13 = vld [vmem:[%s681_s3 + $0x8] sm:$0xff]  ;;  %v478_v14 = vld [vmem:[%s679_s1] sm:$0xff]  ;;  %v493_v61 = vld [vmem:[%s685_s7 + $0x38] sm:$0xff] }
   0xb   :  { %188 = vmatpush.bf16.msra.mxu1 %v475_v5  ;;  %238 = vmatpush.bf16.msra.mxu2 %v475_v5  ;;  %v33_v15 = vld [vmem:[%s678_s0] sm:$0xf]  ;;  %vm201_vm0 = vcmp.lt.s32.totalorder %v200_v23, 32  ;;  %v492_v62 = vld [vmem:[%s685_s7 + $0x30] sm:$0xff]  ;;  %v491_v63 = vld [vmem:[%s685_s7 + $0x28] sm:$0xff] }
   0xc   :  { %v470_v16 = vld [vmem:[%s681_s3] sm:$0xff]  ;;  %344 = vmatpush.bf16.msra.mxu3 %v493_v61  ;;  %v489_v1 = vld [vmem:[%s685_s7 + $0x18] sm:$0xff]  ;;  %v488_v2 = vld [vmem:[%s685_s7 + $0x10] sm:$0xff] }
   0xd   :  { %v495_v17 = vld [vmem:[%s680_s2] ss:$0 sm:$0xff]  ;;  %v487_v3 = vld [vmem:[%s685_s7 + $0x8] sm:$0xff] }
   0xe   :  { %124 = vmatpush.bf16.msra.mxu0 %v482_v6  ;;  %v496_v24 = vld [vmem:[%s682_s4] ss:$0 sm:$0xff] }
   0xf   :  { %189 = vmatpush.bf16.msra.mxu1 %v474_v7  ;;  %239 = vmatpush.bf16.msra.mxu2 %v474_v7  ;;  %v497_v43 = vld [vmem:[%s683_s5] ss:$0 sm:$0xff] }
  0x10   :  { %v498_v46 = vld [vmem:[%s684_s6] ss:$0 sm:$0xff]  ;;  %345 = vmatpush.bf16.msra.mxu3 %v492_v62 }
  0x11   :  { %v490_v0 = vld [vmem:[%s685_s7 + $0x20] sm:$0xff] }
  0x12   :  { %125 = vmatpush.bf16.msra.mxu0 %v481_v8  ;;  %v486_v4 = vld [vmem:[%s685_s7] sm:$0xff] }
  0x13   :  { %190 = vmatpush.bf16.msra.mxu1 %v473_v9  ;;  %240 = vmatpush.bf16.msra.mxu2 %v473_v9 }
  0x14   :  { %346 = vmatpush.bf16.msra.mxu3 %v491_v63 }
  0x16   :  { %126 = vmatpush.bf16.msra.mxu0 %v480_v10 }
  0x17   :  { %191 = vmatpush.bf16.msra.mxu1 %v472_v11  ;;  %241 = vmatpush.bf16.msra.mxu2 %v472_v11 }
  0x18   :  { %347 = vmatpush.bf16.msra.mxu3 %v490_v0 }
  0x1a   :  { %127 = vmatpush.bf16.msra.mxu0 %v479_v12 }
  0x1b   :  { %192 = vmatpush.bf16.msra.mxu1 %v471_v13  ;;  %242 = vmatpush.bf16.msra.mxu2 %v471_v13 }
  0x1c   :  { %348 = vmatpush.bf16.msra.mxu3 %v489_v1 }
  0x1e   :  { %128 = vmatpush.bf16.msra.mxu0 %v478_v14 }
  0x1f   :  { %193 = vmatpush.bf16.msra.mxu1 %v470_v16  ;;  %243 = vmatpush.bf16.msra.mxu2 %v470_v16 }
  0x20   :  { %349 = vmatpush.bf16.msra.mxu3 %v488_v2 }
  0x21   :  { %129 = vmatmul.bf16.vlgmr.msra.gmra.mxu0 %v33_v15 }
  0x24   :  { %350 = vmatpush.bf16.msra.mxu3 %v487_v3 }
  0x28   :  { %351 = vmatpush.bf16.msra.mxu3 %v486_v4 }
  0x9e   :  { %v130_v18 = vpop.f32.mrf.mxu0 }
  0x9f   :  { %v131_v19 = vadd.f32 %v495_v17, %v130_v18 }
  0xa1   :  { %v134_v20 = vpack.c.bf16 %v131_v19, %v131_v19 }
  0xa3   :  { %194 = vmatmul.bf16.vlgmr.msra.gmra.mxu1 %v134_v20  ;;  %v499_v20 = vld [vmem:[%s686_s8] ss:$0 sm:$0xff] }
  0xa6   :  { %v132_v21 = vpop.f32.mrf.mxu0 }
 0x120   :  { %v195_v25 = vpop.f32.mrf.mxu1 }
 0x121   :  { %v196_v26 = vadd.f32 %v496_v24, %v195_v25 }
 0x123   :  { %v204_v27 = vsel %vm201_vm0, %v196_v26, 0.0 }
 0x124   :  { %205 = vadd.xlane.f32.xlu0 %v204_v27 }
 0x128   :  { %v197_v28 = vpop.f32.mrf.mxu1 }
 0x197   :  { %v206_v29 = vpop.xlane.xlu0 %205 }
 0x198   :  { %v207_v30 = vmul.f32 0.03125, %v206_v29 }
 0x19a   :  { %v208_v31 = vsub.f32 %v204_v27, %v207_v30 }
 0x19c   :  { %v209_v32 = vsel %vm201_vm0, %v208_v31, 0.0 }
 0x19d   :  { %v210_v33 = vmul.f32 %v209_v32, %v209_v32 }
 0x19f   :  { %211 = vadd.xlane.f32.xlu0 %v210_v33 }
 0x212   :  { %v212_v34 = vpop.xlane.xlu0 %211 }
 0x213   :  { %v213_v35 = vmul.f32 0.03125, %v212_v34 }
 0x215   :  { %v214_v36 = vadd.f32 1e-05, %v213_v35 }
 0x217   :  { %500 = vrsqrt.f32 %v214_v36  ;;  %vm221_vm2 = vweird.f32 %v214_v36 }
 0x21d   :  { %v501_v37 = vpop.eup %500 }
 0x21e   :  { %v216_v38 = vmul.f32 %v501_v37, %v214_v36  ;;  %vm222_vm1 = vweird.f32 %v501_v37 }
 0x21f   :  { %vm223_vm3 = vmor %vm221_vm2, %vm222_vm1 }
 0x220   :  { %v217_v39 = vmul.f32 %v501_v37, %v216_v38 }
 0x222   :  { %v218_v40 = vmul.f32 0.5, %v217_v39 }
 0x224   :  { %v219_v41 = vsub.f32 1.5, %v218_v40 }
 0x226   :  { %v220_v42 = vmul.f32 %v501_v37, %v219_v41 }
 0x228   :  { %v224_v44 = vsel %vm223_vm3, %v501_v37, %v220_v42 }
 0x229   :  { %v225_v45 = vmul.f32 %v224_v44, %v209_v32 }
 0x22b   :  { %v229_v47 = vmul.f32 %v497_v43, %v225_v45 }
 0x22d   :  { %v233_v48 = vadd.f32 %v498_v46, %v229_v47 }
 0x22f   :  { %v234_v49 = vmax.f32 %v233_v48, 0.0 }
 0x231   :  { %v235_v50 = vpack.c.bf16 %v234_v49, %v234_v49 }
 0x233   :  { %244 = vmatmul.bf16.vlgmr.msra.gmra.mxu2 %v235_v50 }
 0x2b6   :  { %v245_v51 = vpop.f32.mrf.mxu2 }
 0x2b7   :  { %v246_v52 = vadd.f32 %v496_v24, %v245_v51 }
 0x2b9   :  { %v249_v53 = vadd.f32 %v246_v52, %v196_v26 }
 0x2bb   :  { %v250_v54 = vsel %vm201_vm0, %v249_v53, 0.0 }
 0x2bc   :  { %251 = vadd.xlane.f32.xlu1 %v250_v54 }
 0x2be   :  { %v247_v55 = vpop.f32.mrf.mxu2 }
 0x32f   :  { %v252_v56 = vpop.xlane.xlu1 %251 }
 0x330   :  { %v253_v57 = vmul.f32 0.03125, %v252_v56 }
 0x332   :  { %v254_v58 = vsub.f32 %v250_v54, %v253_v57 }
 0x334   :  { %v255_v59 = vsel %vm201_vm0, %v254_v58, 0.0 }
 0x335   :  { %v256_v60 = vmul.f32 %v255_v59, %v255_v59 }
 0x337   :  { %257 = vadd.xlane.f32.xlu1 %v256_v60 }
 0x3aa   :  { %v258_v5 = vpop.xlane.xlu1 %257 }
 0x3ab   :  { %v259_v6 = vmul.f32 0.03125, %v258_v5 }
 0x3ad   :  { %v260_v7 = vadd.f32 1e-05, %v259_v6 }
 0x3af   :  { %502 = vrsqrt.f32 %v260_v7  ;;  %vm267_vm5 = vweird.f32 %v260_v7 }
 0x3b5   :  { %v503_v8 = vpop.eup %502 }
 0x3b6   :  { %v262_v9 = vmul.f32 %v503_v8, %v260_v7  ;;  %vm268_vm4 = vweird.f32 %v503_v8 }
 0x3b7   :  { %vm269_vm6 = vmor %vm267_vm5, %vm268_vm4 }
 0x3b8   :  { %v263_v10 = vmul.f32 %v503_v8, %v262_v9 }
 0x3ba   :  { %v264_v11 = vmul.f32 0.5, %v263_v10 }
 0x3bc   :  { %v265_v12 = vsub.f32 1.5, %v264_v11 }
 0x3be   :  { %v266_v13 = vmul.f32 %v503_v8, %v265_v12 }
 0x3c0   :  { %v270_v14 = vsel %vm269_vm6, %v503_v8, %v266_v13 }
 0x3c1   :  { %v271_v15 = vmul.f32 %v270_v14, %v255_v59 }
 0x3c3   :  { %v272_v16 = vmul.f32 %v497_v43, %v271_v15 }
 0x3c5   :  { %v273_v17 = vadd.f32 %v498_v46, %v272_v16 }
 0x3c7   :  { %v274_v18 = vmax.f32 %v273_v17, 0.0 }
 0x3c9   :  { %v275_v19 = vpack.c.bf16 %v274_v18, %v274_v18 }
 0x3cb   :  { %352 = vmatmul.bf16.vlgmr.msra.gmra.mxu3 %v275_v19 }
 0x44e   :  { %v353_v21 = vpop.f32.mrf.mxu3 }
 0x44f   :  { %v354_v22 = vadd.f32 %v499_v20, %v353_v21 }
 0x451   :  { %357 = vst [vmem:[#allocation2] sm:$0xff] %v354_v22 }
 0x452   :  { %368 = dma.vmem_to_hbm [thread:$0]  %s364_s20, 128, %s366_s23, [#allocation3]  }
 0x456   :  { %v355_v23 = vpop.f32.mrf.mxu3 }
 0x457   :  { %528 = dma.done.wait [#allocation3], 128  }
 0x458   :  { %529 = vsyncadd [#allocation3], 4294967168 }
 0x459   :  { %373 = vsyncpa [#allocation3], 1 }

</bundles_post_ra>
